<compile_context>
chip_gen: v6e
topology: v6e:2x2x1
jax: 0.10.0
libtpu: 0.0.40
codegen_flags: <defaults>
</compile_context>

<pallas_src>
import jax
import jax.numpy as jnp
import numpy as np
from jax.experimental import pallas as pl
from jax.experimental.pallas import tpu as pltpu

MASK = -1.0
_NEG = float(np.finfo(np.float32).min)  # never wins a max; exact -1 handled via floor


def _round_up(x, m):
    return ((x + m - 1) // m) * m


def _default_tile_r():
    # v6e / v7x MXU is 256 wide in N; v5-class (and older) parts are 128 wide and have a
    # tighter scoped-VMEM default, so keep N = 128 there.
    try:
        kind = jax.devices()[0].device_kind.lower()
    except Exception:
        return 256
    if any(t in kind for t in ("v2", "v3", "v4", "v5")):
        return 128
    return 256


def _choose_tile_c(b_c, max_w_pad, d, tile_r,
                   sims_budget=2 << 20, caps_budget=2 << 20):
    """Caption tile bounded by the f32 sims intermediate AND the bf16 caps block."""
    by_sims = sims_budget // (max_w_pad * tile_r * 4)   # f32 (tile_c*max_w_pad, tile_r)
    by_caps = caps_budget // (max_w_pad * d * 2)        # bf16 caps block per buffer
    fit = max(8, (int(min(by_sims, by_caps)) // 8) * 8)
    return int(min(fit, _round_up(b_c, 8)))


def _make_kernel(tile_c, max_w_pad, tile_r):
    def kernel(caps_ref, imgsT_ref, wbias_ref, floor_ref, rvalid_ref, out_ref):
        # caps_ref  : (tile_c*max_w_pad, D) bf16  caption words, caption-major rows
        # imgsT_ref : (D, tile_r)           bf16  pre-transposed flat (image,region) cols
        # wbias_ref : (tile_c, max_w_pad,1) f32   0 for valid words, -FLT_MAX otherwise
        # floor_ref : (tile_c, 1)           f32   -1 if caption shorter than max_w else -FLT_MAX
        # rvalid_ref: (1, tile_r)           int32 1 for valid flat (image,region) columns
        # out_ref   : (tile_c, tile_r)      f32
        sims = jax.lax.dot_general(
            caps_ref[...], imgsT_ref[...],
            dimension_numbers=(((1,), (0,)), ((), ())),   # canonical (M,K) x (K,N)
            preferred_element_type=jnp.float32,
        )                                                 # (tile_c*max_w_pad, tile_r)
        # Single additive word mask (no nested selects); padded / invalid words can
        # never win the max over words.
        sims = sims.reshape(tile_c, max_w_pad, tile_r) + wbias_ref[...]
        out = jnp.max(sims, axis=1)                        # (tile_c, tile_r)
        out = jnp.maximum(out, floor_ref[...])             # exact -1 fill for cropped words
        out_ref[...] = jnp.where(rvalid_ref[...] > 0, out, jnp.float32(MASK))
        # NOTE: if max_w_pad ever grows beyond ~32, split the matmul into 8-sublane word
        # chunks and fold a running jnp.maximum to bound the live f32 intermediate.
    return kernel


def tha_coding(imgs, caps, img_lens, cap_lens, *, max_r=None, max_w=None,
               tile_r=None, tile_c=None):
    """Pallas implementation of THACoding.forward -> (B_i, B_c, max_r) float32."""
    B_i, R, D = imgs.shape
    B_c, W, Dc = caps.shape
    assert D == Dc

    # Data-dependent crop, as in the PyTorch module.  Pass static (bucketed) max_r/max_w
    # to avoid the host sync + per-shape recompile in hot loops.
    if max_r is None:
        max_r = int(jnp.max(img_lens))
    if max_w is None:
        max_w = int(jnp.max(cap_lens))
    max_r = max(int(max_r), 1)
    max_w = max(int(max_w), 1)

    img_lens = img_lens.astype(jnp.int32)
    cap_lens = cap_lens.astype(jnp.int32)

    # ---- padded / flattened geometry --------------------------------------
    max_w_pad = _round_up(max_w, 8)
    if tile_r is None:
        tile_r = _default_tile_r()
    tile_r = int(min(tile_r, max(128, _round_up(B_i * max_r, 128))))
    if tile_c is None:
        tile_c = _choose_tile_c(B_c, max_w_pad, D, tile_r)
    B_c_pad = _round_up(B_c, tile_c)
    n_flat = _round_up(B_i * max_r, tile_r)

    # ---- imgs: (B_i, R, D) -> bf16 (D, n_flat)  (K on sublanes -> no in-kernel relayout)
    imgs_flat = imgs[:, :max_r, :].astype(jnp.bfloat16).reshape(B_i * max_r, D)
    imgs_T = jnp.pad(imgs_flat, ((0, n_flat - B_i * max_r), (0, 0))).T

    # ---- caps: (B_c, W, D) -> bf16 (B_c_pad * max_w_pad, D) ----------------
    caps_p = caps[:, :max_w, :].astype(jnp.bfloat16)
    caps_p = jnp.pad(caps_p, ((0, B_c_pad - B_c), (0, max_w_pad - max_w), (0, 0)))
    caps2d = caps_p.reshape(B_c_pad * max_w_pad, D)

    # ---- additive word bias (0 valid / -FLT_MAX invalid) + per-caption -1 floor
    cap_lens_pad = jnp.pad(cap_lens, (0, B_c_pad - B_c))
    w_idx = jnp.arange(max_w_pad, dtype=jnp.int32)
    w_valid = w_idx[None, :] < jnp.minimum(cap_lens_pad, max_w)[:, None]
    w_bias = jnp.where(w_valid, jnp.float32(0.0), jnp.float32(_NEG))
    w_bias = w_bias.reshape(B_c_pad, max_w_pad, 1).astype(jnp.float32)
    floor = jnp.where(cap_lens_pad < max_w, jnp.float32(MASK), jnp.float32(_NEG))
    floor = floor.reshape(B_c_pad, 1).astype(jnp.float32)

    # ---- region validity over the flattened (image, region) axis -----------
    pos = jnp.arange(n_flat, dtype=jnp.int32)
    img_idx = pos // max_r
    r_idx = pos % max_r
    lens_at = jnp.take(img_lens, jnp.clip(img_idx, 0, B_i - 1))
    r_valid = ((img_idx < B_i) & (r_idx < lens_at)).astype(jnp.int32).reshape(1, n_flat)

    n_c_tiles = B_c_pad // tile_c
    n_r_tiles = n_flat // tile_r

    # ---- grid order: stream the LARGER operand exactly once (its axis outer) ----
    caps_outer = caps2d.size >= imgs_T.size
    if caps_outer:
        grid = (n_c_tiles, n_r_tiles)
        cdx = lambda a, b: a
        rdx = lambda a, b: b
    else:
        grid = (n_r_tiles, n_c_tiles)
        cdx = lambda a, b: b
        rdx = lambda a, b: a

    kernel = _make_kernel(tile_c, max_w_pad, tile_r)

    # ---- scoped-VMEM limit derived from actual (double-buffered) block sizes ----
    block_bytes = 2 * (tile_c * max_w_pad * D * 2      # caps bf16
                       + D * tile_r * 2                # imgsT bf16
                       + tile_c * max_w_pad * 4        # w_bias f32
                       + tile_c * 4                    # floor f32
                       + tile_r * 4                    # r_valid i32
                       + tile_c * tile_r * 4)          # out f32
    sims_bytes = tile_c * max_w_pad * tile_r * 4
    vmem_limit = int(min(max(2 * (block_bytes + sims_bytes) + (8 << 20), 32 << 20),
                         48 << 20))

    grid_spec = pltpu.PrefetchScalarGridSpec(
        num_scalar_prefetch=0,
        grid=grid,
        in_specs=[
            pl.BlockSpec((tile_c * max_w_pad, D), lambda a, b: (cdx(a, b), 0)),   # caps
            pl.BlockSpec((D, tile_r), lambda a, b: (0, rdx(a, b))),               # imgs^T
            pl.BlockSpec((tile_c, max_w_pad, 1), lambda a, b: (cdx(a, b), 0, 0)),  # w bias
            pl.BlockSpec((tile_c, 1), lambda a, b: (cdx(a, b), 0)),               # floor
            pl.BlockSpec((1, tile_r), lambda a, b: (0, rdx(a, b))),               # r valid
        ],
        out_specs=pl.BlockSpec((tile_c, tile_r), lambda a, b: (cdx(a, b), rdx(a, b))),
    )

    out_flat = pl.pallas_call(
        kernel,
        out_shape=jax.ShapeDtypeStruct((B_c_pad, n_flat), jnp.float32),
        grid_spec=grid_spec,
        compiler_params=pltpu.CompilerParams(
            dimension_semantics=("parallel", "parallel"),
            vmem_limit_bytes=vmem_limit,
        ),
    )(caps2d, imgs_T, w_bias, floor, r_valid)

    # (B_c_pad, n_flat) -> (B_i, B_c, max_r).  For max_r >= tile_r, a direct
    # (B_i, B_c_pad, max_r_pad) output layout would remove this transpose pass.
    out = out_flat[:B_c, :B_i * max_r].reshape(B_c, B_i, max_r)
    return jnp.transpose(out, (1, 0, 2))


def tha_coding_reference(imgs, caps, img_lens, cap_lens):
    """Pure-JAX reference mirroring the PyTorch forward (fp32)."""
    max_r = int(jnp.max(img_lens))
    max_w = int(jnp.max(cap_lens))
    sims = jnp.einsum('ird,cwd->icrw', imgs, caps,
                      precision=jax.lax.Precision.HIGHEST)[:, :, :max_r, :max_w]
    img_mask = jnp.arange(max_r)[None, :] < img_lens[:, None]     # (B_i, max_r)
    cap_mask = jnp.arange(max_w)[None, :] < cap_lens[:, None]     # (B_c, max_w)
    mask = img_mask[:, None, :, None] & cap_mask[None, :, None, :]
    sims = jnp.where(mask, sims, jnp.float32(MASK))
    return jnp.max(sims, axis=-1)


if __name__ == "__main__":
    key = jax.random.PRNGKey(0)

    def run_case(B_i, B_c, R, W, D, img_lens, cap_lens, k):
        k_img, k_cap = jax.random.split(k)
        imgs = jax.random.normal(k_img, (B_i, R, D), dtype=jnp.float32)
        caps = jax.random.normal(k_cap, (B_c, W, D), dtype=jnp.float32)

        out = jax.block_until_ready(tha_coding(imgs, caps, img_lens, cap_lens))

        # The only intended deviation from the fp32 PyTorch module is the bf16 cast of
        # the MXU inputs (accumulation stays fp32); compare against the reference on the
        # same bf16-rounded inputs so the check isolates the kernel logic.
        imgs_bf = imgs.astype(jnp.bfloat16).astype(jnp.float32)
        caps_bf = caps.astype(jnp.bfloat16).astype(jnp.float32)
        ref = jax.block_until_ready(
            tha_coding_reference(imgs_bf, caps_bf, img_lens, cap_lens))

        assert out.shape == ref.shape == (B_i, B_c, int(jnp.max(img_lens)))
        np.testing.assert_allclose(np.asarray(out), np.asarray(ref),
                                   rtol=1e-2, atol=1e-2)

    k1, k2 = jax.random.split(key)
    # Case 1: caps >= imgs bytes -> captions-outer grid order.
    run_case(3, 5, 20, 13, 128,
             jnp.array([20, 11, 7], dtype=jnp.int32),
             jnp.array([13, 7, 9, 13, 4], dtype=jnp.int32), k1)
    # Case 2: imgs > caps bytes -> regions-outer grid order (exercises the swap).
    run_case(4, 2, 40, 9, 128,
             jnp.array([40, 25, 3, 17], dtype=jnp.int32),
             jnp.array([9, 4], dtype=jnp.int32), k2)

    print("KERNEL_OK")
</pallas_src>

<mosaic_0001>
module attributes {stable_mosaic.version = 11 : i64} {
  func.func @kernel(%arg0: i32, %arg1: i32, %arg2: memref<128x128xbf16, #tpu.memory_space<vmem>>, %arg3: memref<128x128xbf16, #tpu.memory_space<vmem>>, %arg4: memref<8x16x1xf32, #tpu.memory_space<vmem>>, %arg5: memref<8x1xf32, #tpu.memory_space<vmem>>, %arg6: memref<1x128xi32, #tpu.memory_space<vmem>>, %arg7: memref<8x128xf32, #tpu.memory_space<vmem>>) attributes {dimension_semantics = [#tpu.dimension_semantics<parallel>, #tpu.dimension_semantics<parallel>], iteration_bounds = array<i64: 1, 1>, scalar_prefetch = 0 : i64, scratch_operands = 0 : i64, tpu.core_type = #tpu.core_type<tc>, window_params = [{transform_indices = @transform_0, window_bounds = array<i64: 128, 128>}, {transform_indices = @transform_1, window_bounds = array<i64: 128, 128>}, {transform_indices = @transform_2, window_bounds = array<i64: 8, 16, 1>}, {transform_indices = @transform_3, window_bounds = array<i64: 8, 1>}, {transform_indices = @transform_4, window_bounds = array<i64: 1, 128>}, {transform_indices = @transform_5, window_bounds = array<i64: 8, 128>}]} {
    %c0 = arith.constant 0 : index
    %c0_0 = arith.constant 0 : index
    %0 = vector.load %arg2[%c0, %c0_0] : memref<128x128xbf16, #tpu.memory_space<vmem>>, vector<128x128xbf16>
    %c0_1 = arith.constant 0 : index
    %c0_2 = arith.constant 0 : index
    %1 = vector.load %arg3[%c0_1, %c0_2] : memref<128x128xbf16, #tpu.memory_space<vmem>>, vector<128x128xbf16>
    %cst = arith.constant dense<0.000000e+00> : vector<128x128xf32>
    %2 = tpu.matmul %0, %1, %cst {dimension_numbers = #tpu.dot_dimension_numbers<[1], [0], [0], [1], [0, 0, 1, 1], [], []>} : vector<128x128xbf16>, vector<128x128xbf16>, vector<128x128xf32> -> vector<128x128xf32>
    %3 = vector.shape_cast %2 : vector<128x128xf32> to vector<8x16x128xf32>
    %c0_3 = arith.constant 0 : index
    %c0_4 = arith.constant 0 : index
    %c0_5 = arith.constant 0 : index
    %4 = vector.load %arg4[%c0_3, %c0_4, %c0_5] : memref<8x16x1xf32, #tpu.memory_space<vmem>>, vector<8x16x1xf32>
    %5 = vector.broadcast %4 : vector<8x16x1xf32> to vector<8x16x128xf32>
    %6 = arith.addf %3, %5 : vector<8x16x128xf32>
    %cst_6 = arith.constant dense<0xFF800000> : vector<8x128xf32>
    %7 = vector.multi_reduction <maximumf>, %6, %cst_6 [1] : vector<8x16x128xf32> to vector<8x128xf32>
    %c0_7 = arith.constant 0 : index
    %c0_8 = arith.constant 0 : index
    %8 = vector.load %arg5[%c0_7, %c0_8] : memref<8x1xf32, #tpu.memory_space<vmem>>, vector<8x1xf32>
    %9 = vector.broadcast %8 : vector<8x1xf32> to vector<8x128xf32>
    %10 = arith.maximumf %7, %9 : vector<8x128xf32>
    %c0_9 = arith.constant 0 : index
    %c0_10 = arith.constant 0 : index
    %11 = vector.load %arg6[%c0_9, %c0_10] : memref<1x128xi32, #tpu.memory_space<vmem>>, vector<1x128xi32>
    %c0_i32 = arith.constant 0 : i32
    %12 = vector.broadcast %c0_i32 : i32 to vector<1x128xi32>
    %13 = arith.cmpi sgt, %11, %12 : vector<1x128xi32>
    %cst_11 = arith.constant -1.000000e+00 : f32
    %14 = vector.shape_cast %13 : vector<1x128xi1> to vector<1x128xi1>
    %15 = vector.broadcast %14 : vector<1x128xi1> to vector<8x128xi1>
    %16 = vector.broadcast %cst_11 : f32 to vector<8x128xf32>
    %17 = arith.select %15, %10, %16 : vector<8x128xi1>, vector<8x128xf32>
    %c0_12 = arith.constant 0 : index
    %c0_13 = arith.constant 0 : index
    %18 = vector.load %arg7[%c0_12, %c0_13] : memref<8x128xf32, #tpu.memory_space<vmem>>, vector<8x128xf32>
    tpu.vector_store %arg7[%c0_12, %c0_13], %17 {strides = array<i32>} : memref<8x128xf32, #tpu.memory_space<vmem>>, vector<8x128xf32>,
    return
  }
  func.func @transform_0(%arg0: i32, %arg1: i32) -> (i32, i32) {
    %c0_i32 = arith.constant 0 : i32
    %c0_i32_0 = arith.constant 0 : i32
    return %arg0, %c0_i32 : i32, i32
  }
  func.func @transform_1(%arg0: i32, %arg1: i32) -> (i32, i32) {
    %c0_i32 = arith.constant 0 : i32
    %c0_i32_0 = arith.constant 0 : i32
    return %c0_i32, %arg1 : i32, i32
  }
  func.func @transform_2(%arg0: i32, %arg1: i32) -> (i32, i32, i32) {
    %c0_i32 = arith.constant 0 : i32
    %c0_i32_0 = arith.constant 0 : i32
    %c0_i32_1 = arith.constant 0 : i32
    return %arg0, %c0_i32, %c0_i32_0 : i32, i32, i32
  }
  func.func @transform_3(%arg0: i32, %arg1: i32) -> (i32, i32) {
    %c0_i32 = arith.constant 0 : i32
    %c0_i32_0 = arith.constant 0 : i32
    return %arg0, %c0_i32 : i32, i32
  }
  func.func @transform_4(%arg0: i32, %arg1: i32) -> (i32, i32) {
    %c0_i32 = arith.constant 0 : i32
    %c0_i32_0 = arith.constant 0 : i32
    return %c0_i32, %arg1 : i32, i32
  }
  func.func @transform_5(%arg0: i32, %arg1: i32) -> (i32, i32) {
    %c0_i32 = arith.constant 0 : i32
    return %arg0, %arg1 : i32, i32
  }
}

</mosaic_0001>

<bundles_post_ra>
// kernel: tpu_custom_call.1
= control target key start
LH: loop header
LB: loop body
LE: loop exit
PB: predicated region body
PF: predicated region fallthrough
CT: control target
= control target key end

     0   :  { %v619_v2 = vmov 0   ;;  %s759_s0 = inlined_call_operand.vmem [shape: bf16[128,128], index: 0, kind: input, shape index: {}]   ;;  %s760_s1 = inlined_call_operand.vmem [shape: bf16[128,128], index: 1, kind: input, shape index: {}]   ;;  %s761_s2 = inlined_call_operand.vmem [shape: f32[8,16,1], index: 2, kind: input, shape index: {}]   ;;  %s762_s3 = inlined_call_operand.vmem [shape: f32[8,1], index: 3, kind: input, shape index: {}]   ;;  %s763_s4 = inlined_call_operand.vmem [shape: s32[1,128], index: 4, kind: input, shape index: {}]   ;;  %s764_s5 = inlined_call_operand.hbm [shape: f32[8,128], index: 5, kind: output, shape index: {}]  }
   0x1   :  { %v581_v0 = vld [vmem:[%s760_s1 + $0x38] sm:$0xff]   ;;  %v582_v1 = vld [vmem:[%s760_s1 + $0x30] sm:$0xff]   ;;  %579 = vset.pattern.permute.xlu0 %v619_v2  ;;  %580 = vset.pattern.permute.xlu1 %v619_v2  ;;  %v583_v3 = vld [vmem:[%s760_s1 + $0x28] sm:$0xff]  }
   0x2   :  { %529 = vmatprep.subr.bf16.mxu0 %v581_v0  ;;  %561 = vmatprep.subr.bf16.mxu1 %v581_v0  ;;  %v584_v4 = vld [vmem:[%s760_s1 + $0x20] sm:$0xff]   ;;  %v585_v7 = vld [vmem:[%s760_s1 + $0x18] sm:$0xff]   ;;  %v586_v8 = vld [vmem:[%s760_s1 + $0x10] sm:$0xff]  }
   0x3   :  { %530 = vmatpush3.bf16.msra.mxu0 %v581_v0  ;;  %569 = vmatpush3.bf16.msra.mxu1 %v581_v0  ;;  %v589_v5 = vld [vmem:[%s759_s0] sm:$0xff]   ;;  %v249_v9 = vld [vmem:[%s761_s2 + $0x10] sm:$0xff]  ;;  %v250_v11 = vld [vmem:[%s761_s2 + $0x18] sm:$0xff] }
   0x4   :  { %531 = vmatprep.subr.bf16.mxu0 %v582_v1  ;;  %562 = vmatprep.subr.bf16.mxu1 %v582_v1  ;;  %v590_v6 = vld [vmem:[%s759_s0 + $0x20] sm:$0xff]   ;;  %v252_v12 = vld [vmem:[%s761_s2 + $0x28] sm:$0xff] }
   0x5   :  { %545 = vmatprep.mubr.bf16.mxu0 %v589_v5  ;;  %553 = vmatprep.mubr.bf16.mxu1 %v590_v6  ;;  %v251_v10 = vld [vmem:[%s761_s2 + $0x20] sm:$0xff]  ;;  %v587_v13 = vld [vmem:[%s760_s1 + $0x8] sm:$0xff]  }
   0x6   :  { %275 = vperm.xlu0 %579, %v249_v9   ;;  %285 = vperm.xlu1 %580, %v251_v10   ;;  %v247_v14 = vld [vmem:[%s761_s2] sm:$0xff]  ;;  %v248_v15 = vld [vmem:[%s761_s2 + $0x8] sm:$0xff] }
   0x7   :  { %532 = vmatpush3.bf16.msra.mxu0 %v582_v1  ;;  %570 = vmatpush3.bf16.msra.mxu1 %v582_v1 }
   0x8   :  { %533 = vmatprep.subr.bf16.mxu0 %v583_v3  ;;  %563 = vmatprep.subr.bf16.mxu1 %v583_v3 }
   0xa   :  { %280 = vperm.xlu0 %579, %v250_v11   ;;  %290 = vperm.xlu1 %580, %v252_v12  }
   0xb   :  { %534 = vmatpush3.bf16.msra.mxu0 %v583_v3  ;;  %571 = vmatpush3.bf16.msra.mxu1 %v583_v3 }
   0xc   :  { %535 = vmatprep.subr.bf16.mxu0 %v584_v4  ;;  %564 = vmatprep.subr.bf16.mxu1 %v584_v4 }
   0xf   :  { %536 = vmatpush3.bf16.msra.mxu0 %v584_v4  ;;  %572 = vmatpush3.bf16.msra.mxu1 %v584_v4 }
  0x10   :  { %537 = vmatprep.subr.bf16.mxu0 %v585_v7  ;;  %565 = vmatprep.subr.bf16.mxu1 %v585_v7 }
  0x13   :  { %538 = vmatpush3.bf16.msra.mxu0 %v585_v7  ;;  %573 = vmatpush3.bf16.msra.mxu1 %v585_v7 }
  0x14   :  { %539 = vmatprep.subr.bf16.mxu0 %v586_v8  ;;  %566 = vmatprep.subr.bf16.mxu1 %v586_v8 }
  0x15   :  { %10 = vsyncpa [#allocation3], 0  ;;  %v588_v16 = vld [vmem:[%s760_s1] sm:$0xff]   ;;  %265 = vperm.xlu0 %579, %v247_v14   ;;  %270 = vperm.xlu1 %580, %v248_v15   ;;  %v253_v17 = vld [vmem:[%s761_s2 + $0x30] sm:$0xff]  ;;  %vm460_vm1 = vcmask 1041409   ;;  %vm463_vm2 = vcmask 1042434  }
  0x16   :  { %v254_v18 = vld [vmem:[%s761_s2 + $0x38] sm:$0xff]  ;;  %v591_v19 = vld [vmem:[%s759_s0 + $0x8] sm:$0xff]   ;;  %v255_v21 = vld [vmem:[%s761_s2 + $0x40] sm:$0xff]  ;;  %vm466_vm3 = vcmask 1043459   ;;  %vm469_vm4 = vcmask 1044484   ;;  %vm472_vm5 = vcmask 1045509  }
  0x17   :  { %540 = vmatpush3.bf16.msra.mxu0 %v586_v8  ;;  %574 = vmatpush3.bf16.msra.mxu1 %v586_v8  ;;  %v592_v20 = vld [vmem:[%s759_s0 + $0x28] sm:$0xff]   ;;  %v593_v23 = vld [vmem:[%s759_s0 + $0x10] sm:$0xff]   ;;  %v258_v26 = vld [vmem:[%s761_s2 + $0x58] sm:$0xff]  ;;  %vm475_vm6 = vcmask 1046534   ;;  %vm478_vm7 = vcmask 1047559  }
  0x18   :  { %541 = vmatprep.subr.bf16.mxu0 %v587_v13  ;;  %567 = vmatprep.subr.bf16.mxu1 %v587_v13  ;;  %v256_v22 = vld [vmem:[%s761_s2 + $0x48] sm:$0xff]  ;;  %v594_v24 = vld [vmem:[%s759_s0 + $0x30] sm:$0xff]   ;;  %v595_v27 = vld [vmem:[%s759_s0 + $0x18] sm:$0xff]  }
  0x19   :  { %295 = vperm.xlu0 %579, %v253_v17   ;;  %300 = vperm.xlu1 %580, %v254_v18   ;;  %v257_v25 = vld [vmem:[%s761_s2 + $0x50] sm:$0xff]  ;;  %v596_v28 = vld [vmem:[%s759_s0 + $0x38] sm:$0xff]   ;;  %v259_v29 = vld [vmem:[%s761_s2 + $0x60] sm:$0xff] }
  0x1a   :  { %v260_v30 = vld [vmem:[%s761_s2 + $0x68] sm:$0xff]  ;;  %v261_v31 = vld [vmem:[%s761_s2 + $0x70] sm:$0xff]  ;;  %v262_v32 = vld [vmem:[%s761_s2 + $0x78] sm:$0xff] }
  0x1b   :  { %542 = vmatpush3.bf16.msra.mxu0 %v587_v13  ;;  %575 = vmatpush3.bf16.msra.mxu1 %v587_v13  ;;  %v415_v33 = vld [vmem:[%s762_s3] sm:$0xff] }
  0x1c   :  { %543 = vmatprep.subr.bf16.mxu0 %v588_v16  ;;  %568 = vmatprep.subr.bf16.mxu1 %v588_v16 }
  0x1d   :  { %305 = vperm.xlu0 %579, %v255_v21   ;;  %310 = vperm.xlu1 %580, %v256_v22  }
  0x1f   :  { %544 = vmatpush3.bf16.msra.mxu0 %v588_v16  ;;  %576 = vmatpush3.bf16.msra.mxu1 %v588_v16 }
  0x21   :  { %315 = vperm.xlu0 %579, %v257_v25   ;;  %320 = vperm.xlu1 %580, %v258_v26  }
  0x22   :  { %546 = vmatmul.mubr.bf16.vlgmr.msra.gmra.mxu0 %v591_v19  ;;  %554 = vmatmul.mubr.bf16.vlgmr.msra.gmra.mxu1 %v592_v20 }
  0x23   :  { %549 = vmatprep.mubr.bf16.mxu0 %v593_v23  ;;  %557 = vmatprep.mubr.bf16.mxu1 %v594_v24 }
  0x25   :  { %325 = vperm.xlu0 %579, %v259_v29   ;;  %330 = vperm.xlu1 %580, %v260_v30  }
  0x29   :  { %335 = vperm.xlu0 %579, %v261_v31   ;;  %340 = vperm.xlu1 %580, %v262_v32  }
  0x2a   :  { %550 = vmatmul.mubr.bf16.gmra.mxu0 %v595_v27  ;;  %558 = vmatmul.mubr.bf16.gmra.mxu1 %v596_v28 }
  0x2d   :  { %418 = vperm.xlu0 %579, %v415_v33  }
  0x81   :  { %v276_v34 = vpop.permute.xlu0 %275  ;;  %v286_v35 = vpop.permute.xlu1 %285 }
  0x85   :  { %v281_v36 = vpop.permute.xlu0 %280  ;;  %v291_v37 = vpop.permute.xlu1 %290 }
  0x90   :  { %v266_v38 = vpop.permute.xlu0 %265  ;;  %v271_v39 = vpop.permute.xlu1 %270 }
  0x94   :  { %v296_v40 = vpop.permute.xlu0 %295  ;;  %v301_v41 = vpop.permute.xlu1 %300 }
  0x98   :  { %v306_v42 = vpop.permute.xlu0 %305  ;;  %v311_v43 = vpop.permute.xlu1 %310 }
  0x9c   :  { %v316_v46 = vpop.permute.xlu0 %315  ;;  %v321_v47 = vpop.permute.xlu1 %320 }
  0xa0   :  { %v326_v60 = vpop.permute.xlu0 %325  ;;  %v331_v61 = vpop.permute.xlu1 %330 }
  0xa4   :  { %v336_v17 = vpop.permute.xlu0 %335  ;;  %v341_v18 = vpop.permute.xlu1 %340 }
  0xe2   :  { %v547_v44 = vpop.f32.mrf.mxu0  ;;  %v555_v45 = vpop.f32.mrf.mxu1 }
  0xe3   :  { %v345_v52 = vadd.f32 %v547_v44, %v276_v34  ;;  %v353_v53 = vadd.f32 %v555_v45, %v316_v46 }
  0xe4   :  { %v184_v48 = vpop.f32.mrf.mxu0  ;;  %v216_v49 = vpop.f32.mrf.mxu1 }
  0xe5   :  { %v343_v56 = vadd.f32 %v266_v38, %v184_v48  ;;  %v351_v57 = vadd.f32 %v306_v42, %v216_v49 }
  0xe6   :  { %v548_v50 = vpop.f32.mrf.mxu0  ;;  %v556_v51 = vpop.f32.mrf.mxu1 }
  0xe7   :  { %v346_v54 = vadd.f32 %v548_v50, %v281_v36  ;;  %v354_v55 = vadd.f32 %v556_v51, %v321_v47 }
  0xe8   :  { %v187_v58 = vpop.f32.mrf.mxu0  ;;  %v219_v59 = vpop.f32.mrf.mxu1 }
  0xe9   :  { %v366_v62 = vmax.f32 %v345_v52, %v346_v54  ;;  %v394_v63 = vmax.f32 %v353_v53, %v354_v55  ;;  %v344_v0 = vadd.f32 %v271_v39, %v187_v58  ;;  %v352_v1 = vadd.f32 %v311_v43, %v219_v59 }
  0xea   :  { %v551_v3 = vpop.f32.mrf.mxu0  ;;  %v559_v4 = vpop.f32.mrf.mxu1  ;;  %v446_v52 = vlaneseq }
  0xeb   :  { %v367_v5 = vrot.slane %v366_v62, 4  ;;  %v395_v6 = vrot.slane %v394_v63, 4  ;;  %v359_v7 = vmax.f32 %v343_v56, %v344_v0  ;;  %v387_v8 = vmax.f32 %v351_v57, %v352_v1 }
  0xec   :  { %v200_v9 = vpop.f32.mrf.mxu0  ;;  %v232_v10 = vpop.f32.mrf.mxu1  ;;  %v349_v14 = vadd.f32 %v551_v3, %v296_v40  ;;  %v357_v23 = vadd.f32 %v559_v4, %v336_v17  ;;  %v447_v3 = vshrl.u32 %v446_v52, 7 }
  0xed   :  { %v368_v11 = vmax.f32 %v366_v62, %v367_v5  ;;  %v360_v12 = vrot.slane %v359_v7, 4  ;;  %v388_v13 = vrot.slane %v387_v8, 4  ;;  %v396_v20 = vmax.f32 %v394_v63, %v395_v6 }
  0xee   :  { %v552_v15 = vpop.f32.mrf.mxu0  ;;  %v560_v16 = vpop.f32.mrf.mxu1  ;;  %v347_v24 = vadd.f32 %v286_v35, %v200_v9  ;;  %v355_v32 = vadd.f32 %v326_v60, %v232_v10 }
  0xef   :  { %v369_v19 = vrot.slane %v368_v11, 2  ;;  %v361_v21 = vmax.f32 %v359_v7, %v360_v12  ;;  %v389_v22 = vmax.f32 %v387_v8, %v388_v13  ;;  %v350_v25 = vadd.f32 %v552_v15, %v301_v41  ;;  %v443_v41 = vld [vmem:[%s763_s4] sm:$0x1]  ;;  %s620_s4 = smov [#allocation2]  }
  0xf0   :  { %v358_v26 = vadd.f32 %v560_v16, %v341_v18  ;;  %v203_v27 = vpop.f32.mrf.mxu0  ;;  %v235_v28 = vpop.f32.mrf.mxu1  ;;  %v397_v39 = vrot.slane %v396_v20, 2  ;;  %vm444_vm0 = vcmp.gt.s32.totalorder %v443_v41, 0  ;;  %v448_v18 = vsub.s32 0, %v447_v3  ;;  %s489_s6 = sshll.u32 %s620_s4, 4  ;;  %s490_s6 = int_to_ptr.vmem [resolvable:$true] %s489_s6 }
  0xf1   :  { %v370_v29 = vmax.f32 %v368_v11, %v369_v19  ;;  %v362_v30 = vrot.slane %v361_v21, 2  ;;  %v390_v31 = vrot.slane %v389_v22, 2  ;;  %v380_v33 = vmax.f32 %v349_v14, %v350_v25  ;;  %s597_s7 = scalar_lea.vmem %s490_s6, 128  ;;  %p602_p1 = scmp.lt.s32.totalorder %s490_s6, %s490_s6 }
  0xf2   :  { %v408_v34 = vmax.f32 %v357_v23, %v358_v26  ;;  %v348_v36 = vadd.f32 %v291_v37, %v203_v27  ;;  %v356_v38 = vadd.f32 %v331_v61, %v235_v28  ;;  %v398_v51 = vmax.f32 %v396_v20, %v397_v39  ;;  %v419_v37 = vpop.permute.xlu0 %418  ;;  %p598_p0 = scmp.ne.s32.totalorder %s490_s6, %s597_s7  ;;  %p603_p2 = scmp.lt.s32.totalorder %s597_s7, %s597_s7 }
  0xf3   :  { %v381_v40 = vrot.slane %v380_v33, 4  ;;  %v371_v45 = vrot.slane %v370_v29, 1  ;;  %v363_v46 = vmax.f32 %v361_v21, %v362_v30  ;;  %v391_v35 = vmax.f32 %v389_v22, %v390_v31 }
  0xf4   :  { %v409_v42 = vrot.slane %v408_v34, 4  ;;  %v373_v43 = vmax.f32 %v347_v24, %v348_v36  ;;  %v401_v44 = vmax.f32 %v355_v32, %v356_v38  ;;  %v420_v0 = vrot.slane %v419_v37, 1  ;;  %p604_p3 = por %p603_p2, %p602_p1 }
  0xf5   :  { %v382_v47 = vmax.f32 %v380_v33, %v381_v40  ;;  %v372_v57 = vmax.f32 %v370_v29, %v371_v45  ;;  %v364_v58 = vrot.slane %v363_v46, 1  ;;  %v392_v59 = vrot.slane %v391_v35, 1 }
  0xf6   :  { %v410_v48 = vmax.f32 %v408_v34, %v409_v42  ;;  %v374_v49 = vrot.slane %v373_v43, 4  ;;  %v402_v50 = vrot.slane %v401_v44, 4  ;;  %v399_v1 = vrot.slane %v398_v51, 1  ;;  %p605_p4 = pnand %p604_p3, %p598_p0 }
  0xf7   :  { %v383_v53 = vrot.slane %v382_v47, 2  ;;  %v445_v7 = vsel %vm444_vm0, 1, %v619_v2  ;;  %v436_v8 = vmax.f32 %v372_v57, %v420_v0  ;;  %v365_v9 = vmax.f32 %v363_v46, %v364_v58 }
  0xf8   :  { %v411_v54 = vrot.slane %v410_v48, 2  ;;  %v375_v55 = vmax.f32 %v373_v43, %v374_v49  ;;  %v403_v56 = vmax.f32 %v401_v44, %v402_v50  ;;  %v393_v11 = vmax.f32 %v391_v35, %v392_v59 }
  0xf9   :  { %v384_v60 = vmax.f32 %v382_v47, %v383_v53  ;;  %v400_v15 = vmax.f32 %v398_v51, %v399_v1  ;;  %v424_v16 = vrot.slane %v419_v37, 5  ;;  %v422_v17 = vrot.slane %v419_v37, 3 }
  0xfa   :  { %v412_v61 = vmax.f32 %v410_v48, %v411_v54  ;;  %v376_v62 = vrot.slane %v375_v55, 2  ;;  %v404_v63 = vrot.slane %v403_v56, 2  ;;  %v423_v19 = vrot.slane %v419_v37, 4 }
  0xfb   :  { %v385_v4 = vrot.slane %v384_v60, 1  ;;  %v421_v21 = vrot.slane %v419_v37, 2  ;;  %v459_v23 = vrot.slane %v436_v8, 7  ;;  %v435_v24 = vmax.f32 %v365_v9, %v419_v37 }
  0xfc   :  { %v377_v5 = vmax.f32 %v375_v55, %v376_v62  ;;  %v405_v6 = vmax.f32 %v403_v56, %v404_v63  ;;  %v413_v10 = vrot.slane %v412_v61, 1  ;;  %v439_v2 = vmax.f32 %v393_v11, %v423_v19 }
  0xfd   :  { %v386_v12 = vmax.f32 %v384_v60, %v385_v4  ;;  %v425_v28 = vrot.slane %v419_v37, 6  ;;  %v440_v29 = vmax.f32 %v400_v15, %v424_v16  ;;  %v426_v30 = vrot.slane %v419_v37, 7 }
  0xfe   :  { %v378_v13 = vrot.slane %v377_v5, 1  ;;  %v406_v14 = vrot.slane %v405_v6, 1  ;;  %v414_v26 = vmax.f32 %v412_v61, %v413_v10  ;;  %v461_v33 = vsel %vm460_vm1, %v459_v23, %v435_v24 }
  0xff   :  { %v438_v25 = vmax.f32 %v386_v12, %v422_v17  ;;  %v449_v38 = vrot.slane %v445_v7, %v448_v18  ;;  %v468_v39 = vrot.slane %v439_v2, 4  ;;  %v471_v42 = vrot.slane %v440_v29, 3 }
 0x100   :  { %v379_v20 = vmax.f32 %v377_v5, %v378_v13  ;;  %v407_v22 = vmax.f32 %v405_v6, %v406_v14  ;;  %v442_v36 = vmax.f32 %v414_v26, %v426_v30 }
 0x101   :  { %v465_v34 = vrot.slane %v438_v25, 5  ;;  %vm450_vm8 = vcmp.eq.s32.totalorder %v449_v38, 1 }
 0x102   :  { %v437_v27 = vmax.f32 %v379_v20, %v421_v21  ;;  %v441_v32 = vmax.f32 %v407_v22, %v425_v28  ;;  %v477_v35 = vrot.slane %v442_v36, 1 }
 0x104   :  { %v462_v31 = vrot.slane %v437_v27, 6  ;;  %v474_v45 = vrot.slane %v441_v32, 2 }
 0x106   :  { %v464_v40 = vsel %vm463_vm2, %v462_v31, %v461_v33 }
 0x107   :  { %v467_v43 = vsel %vm466_vm3, %v465_v34, %v464_v40 }
 0x108   :  { %v470_v44 = vsel %vm469_vm4, %v468_v39, %v467_v43 }
 0x109   :  { %v473_v46 = vsel %vm472_vm5, %v471_v42, %v470_v44 }
 0x10a   :  { %v476_v41 = vsel %vm475_vm6, %v474_v45, %v473_v46 }
 0x10b   :  { %v479_v47 = vsel %vm478_vm7, %v477_v35, %v476_v41 }
 0x10c   :  { %v481_v48 = vsel %vm450_vm8, %v479_v47, -1.0 }
 0x10d   :  { %482 = vst [vmem:[#allocation2] sm:$0xff] %v481_v48 }
 0x10e   :  { %608 = shalt.err (!%p605_p4)
}
 0x10f   :  { %492 = dma.vmem_to_hbm [thread:$0]  %s490_s6, 128, %s764_s5, [#allocation3]  }
 0x110   :  { %617 = dma.done.wait [#allocation3], 128  }
 0x111   :  { %618 = vsyncadd [#allocation3], 4294967168 }
 0x112   :  { %496 = vsyncpa [#allocation3], 1 }

</bundles_post_ra>
